<compile_context>
chip_gen: v7x
topology: tpu7x:2x2x1
jax: 0.10.0
libtpu: 0.0.40
codegen_flags: <defaults>
</compile_context>

<pallas_src>
import functools

import jax
import jax.numpy as jnp
from jax.experimental import pallas as pl
from jax.experimental.pallas import tpu as pltpu

LANE = 128
SUBLANE_BF16 = 16          # bf16 packs 16 rows per sublane tile
NEG_INF = -1e30


def _round_up(n, m):
    return ((n + m - 1) // m) * m


def _pad2(a, shape, value=0.0):
    return jnp.pad(a, [(0, s - d) for s, d in zip(shape, a.shape)],
                   constant_values=value)


# ---------------------------------------------------------------------------
# Kernel: tiled backbone contraction (f32 accumulator) -> fused heads
#   head layer 1: one matmul  h @ [w1 | v1]      -> ReLU
#   head layer 2: one matmul  t @ blockdiag(w2, v2)
#   instance half -> L2 normalize ; cluster half -> softmax (mask baked in bias)
# ---------------------------------------------------------------------------
def network_kernel(x_ref, wb_ref, bb_ref, w1_ref, b1_ref, w2_ref, b2_ref,
                   out_ref, h_acc):
    f32 = jnp.float32
    k = pl.program_id(1)

    @pl.when(k == 0)
    def _():
        h_acc[...] = jnp.zeros_like(h_acc)

    # stand-in resnet backbone: partial contraction over this Din tile
    h_acc[...] += jnp.dot(x_ref[...], wb_ref[...], preferred_element_type=f32)

    @pl.when(k == pl.num_programs(1) - 1)
    def _():
        h = jnp.maximum(h_acc[...] + bb_ref[...], 0.0)

        # fused first layers of both projectors: h @ [w1 | v1]
        t = jnp.dot(h.astype(w1_ref.dtype), w1_ref[...],
                    preferred_element_type=f32)
        t = jnp.maximum(t + b1_ref[...], 0.0)

        # fused second layers: t @ blockdiag(w2, v2); the cluster-half bias
        # carries the class mask (-1e30 in padded columns).
        # TODO(synk): v5e — split into two 128-wide dots (see header note).
        y = jnp.dot(t.astype(w2_ref.dtype), w2_ref[...],
                    preferred_element_type=f32)
        y = y + b2_ref[...]

        fp = out_ref.shape[1] // 2
        z = y[:, :fp]          # instance logits (padded cols exactly zero)
        logits = y[:, fp:]     # cluster logits (padded cols == -1e30 via bias)

        # instance head: row L2 normalize (rsqrt on the EUP)
        inv_norm = jax.lax.rsqrt(
            jnp.maximum(jnp.sum(z * z, axis=1, keepdims=True), 1e-24))
        out_ref[:, :fp] = (z * inv_norm).astype(out_ref.dtype)

        # cluster head: softmax (padded columns exp to exactly 0)
        m = jnp.max(logits, axis=1, keepdims=True)
        e = jnp.exp(logits - m)
        denom = jnp.sum(e, axis=1, keepdims=True)
        out_ref[:, fp:] = (e * pl.reciprocal(denom, approx=True)).astype(out_ref.dtype)


# ---------------------------------------------------------------------------
# One-time parameter preparation: pad lane dims, fuse head stacks, bake the
# class mask into the cluster bias, cast MXU operands to bf16.
# ---------------------------------------------------------------------------
def prepare_params(params, feature_dim, class_num, *, tk=512):
    f32, bf16 = jnp.float32, jnp.bfloat16
    wb = params["wb"]
    din, rep = wb.shape
    din_p = _round_up(din, tk)                  # multiple of the Din tile
    r_p = _round_up(rep, LANE)
    f_p = _round_up(max(feature_dim, class_num), LANE)

    wb_p = _pad2(wb, (din_p, r_p)).astype(bf16)
    bb_p = _pad2(params["bb"], (1, r_p)).astype(f32)

    # fused first layers: [w1 | v1], [b1 | c1]
    w1cat = jnp.concatenate(
        [_pad2(params["w1"], (r_p, r_p)), _pad2(params["v1"], (r_p, r_p))],
        axis=1).astype(bf16)
    b1cat = jnp.concatenate(
        [_pad2(params["b1"], (1, r_p)), _pad2(params["c1"], (1, r_p))],
        axis=1).astype(f32)

    # fused second layers: block-diagonal so each half only sees its own weight
    w2_p = _pad2(params["w2"], (r_p, f_p))
    v2_p = _pad2(params["v2"], (r_p, f_p))
    zeros = jnp.zeros((r_p, f_p), f32)
    w2blk = jnp.concatenate(
        [jnp.concatenate([w2_p, zeros], axis=1),
         jnp.concatenate([zeros, v2_p], axis=1)], axis=0).astype(bf16)
    # instance bias padded with 0 (keeps padded z columns exactly zero);
    # cluster bias padded with -1e30 (bakes the class mask into the logits).
    b2cat = jnp.concatenate(
        [_pad2(params["b2"], (1, f_p)),
         _pad2(params["c2"], (1, f_p), value=NEG_INF)], axis=1).astype(f32)

    return {"wb": wb_p, "bb": bb_p, "w1": w1cat, "b1": b1cat,
            "w2": w2blk, "b2": b2cat}


def _vmem_limit_bytes(tm, tk, r_p, f_p):
    bf, f32 = 2, 4
    est = (2 * tm * tk * bf                                   # x double buffer
           + 2 * tk * r_p * bf                                # wb double buffer
           + (r_p * 2 * r_p + 2 * r_p * 2 * f_p) * bf         # resident heads
           + (r_p + 2 * r_p + 2 * f_p) * f32                  # biases
           + 2 * tm * 2 * f_p * f32                           # output buffers
           + tm * r_p * f32)                                  # h accumulator
    # >= our needs on every chip, <= v7x's 64 MiB physical VMEM
    return int(min(max(2 * est, 16 * 2**20), 48 * 2**20))


# ---------------------------------------------------------------------------
# Forward: one pallas_call for all three views.
# ---------------------------------------------------------------------------
def network_forward(x_i, x_j, x_w, prep, feature_dim, class_num,
                    *, tm_max=256, tk=512):
    bf16 = jnp.bfloat16
    B = x_i.shape[0]
    bt = 3 * B

    # Padded sizes come from the (static) prepared weight shapes — nothing
    # traced feeds jnp.pad / BlockSpec construction.
    din_p, r_p = prep["wb"].shape
    f2 = prep["b2"].shape[1]                  # 2 * f_p
    f_p = f2 // 2
    assert din_p % tk == 0, "Din padding must match the contraction tile"

    # cast to bf16 BEFORE concat/reshape/pad to halve wrapper HBM traffic
    x = jnp.concatenate(
        [x_i.reshape(B, -1).astype(bf16),
         x_j.reshape(B, -1).astype(bf16),
         x_w.reshape(B, -1).astype(bf16)], axis=0)      # row-major == torch .view
    din = x.shape[1]

    bt_p = _round_up(bt, SUBLANE_BF16)
    if bt_p <= tm_max:
        tm = bt_p
    else:
        tm = tm_max
        bt_p = _round_up(bt_p, tm)
    if bt_p != bt or din_p != din:
        x = jnp.pad(x, ((0, bt_p - bt), (0, din_p - din)))

    grid = (bt_p // tm, din_p // tk)

    out = pl.pallas_call(
        network_kernel,
        out_shape=jax.ShapeDtypeStruct((bt_p, f2), jnp.float32),
        grid_spec=pltpu.PrefetchScalarGridSpec(
            num_scalar_prefetch=0,
            grid=grid,
            in_specs=[
                pl.BlockSpec((tm, tk), lambda i, k: (i, k)),        # x tile
                pl.BlockSpec((tk, r_p), lambda i, k: (k, 0)),       # wb tile
                pl.BlockSpec((1, r_p), lambda i, k: (0, 0)),        # bb (resident)
                pl.BlockSpec((r_p, 2 * r_p), lambda i, k: (0, 0)),  # w1 (resident)
                pl.BlockSpec((1, 2 * r_p), lambda i, k: (0, 0)),    # b1 (resident)
                pl.BlockSpec((2 * r_p, f2), lambda i, k: (0, 0)),   # w2 (resident)
                pl.BlockSpec((1, f2), lambda i, k: (0, 0)),         # b2 (resident)
            ],
            out_specs=pl.BlockSpec((tm, f2), lambda i, k: (i, 0)),
            scratch_shapes=[pltpu.VMEM((tm, r_p), jnp.float32)],
        ),
        compiler_params=pltpu.CompilerParams(
            dimension_semantics=("parallel", "arbitrary"),
            vmem_limit_bytes=_vmem_limit_bytes(tm, tk, r_p, f_p),
        ),
    )(x, prep["wb"], prep["bb"], prep["w1"], prep["b1"], prep["w2"], prep["b2"])

    z = out[:bt, :feature_dim]
    c = out[:bt, f_p:f_p + class_num]
    return (z[:B], z[B:2 * B], z[2 * B:], c[:B], c[B:2 * B], c[2 * B:])


# ---------------------------------------------------------------------------
# Deterministic parameter construction (shapes implied by the module __init__).
# Weights are stored as (in, out), so the kernel computes x @ W + b, matching
# torch's Linear (x @ W.T + b with W of shape (out, in)).
# ---------------------------------------------------------------------------
def init_params(key, in_dim, rep_dim, feature_dim, class_num):
    ks = jax.random.split(key, 10)
    s = 0.05
    return {
        "wb": s * jax.random.normal(ks[0], (in_dim, rep_dim), jnp.float32),
        "bb": s * jax.random.normal(ks[1], (1, rep_dim), jnp.float32),
        "w1": s * jax.random.normal(ks[2], (rep_dim, rep_dim), jnp.float32),
        "b1": s * jax.random.normal(ks[3], (1, rep_dim), jnp.float32),
        "w2": s * jax.random.normal(ks[4], (rep_dim, feature_dim), jnp.float32),
        "b2": s * jax.random.normal(ks[5], (1, feature_dim), jnp.float32),
        "v1": s * jax.random.normal(ks[6], (rep_dim, rep_dim), jnp.float32),
        "c1": s * jax.random.normal(ks[7], (1, rep_dim), jnp.float32),
        "v2": s * jax.random.normal(ks[8], (rep_dim, class_num), jnp.float32),
        "c2": s * jax.random.normal(ks[9], (1, class_num), jnp.float32),
    }


# Pure-JAX f32 reference (unfused, unpadded) for a loose correctness check.
def reference_forward(x_i, x_j, x_w, params):
    def view(xv):
        h = jnp.maximum(xv.reshape(xv.shape[0], -1) @ params["wb"] + params["bb"], 0.0)
        t = jnp.maximum(h @ params["w1"] + params["b1"], 0.0)
        z = t @ params["w2"] + params["b2"]
        z = z / jnp.maximum(jnp.linalg.norm(z, axis=1, keepdims=True), 1e-12)
        u = jnp.maximum(h @ params["v1"] + params["c1"], 0.0)
        c = jax.nn.softmax(u @ params["v2"] + params["c2"], axis=1)
        return z, c

    (zi, ci), (zj, cj), (zw, cw) = view(x_i), view(x_j), view(x_w)
    return zi, zj, zw, ci, cj, cw


if __name__ == "__main__":
    # Small shapes consistent with the module: three augmented image views.
    B, C, H, W = 8, 4, 16, 16
    rep_dim = 32          # resnet.rep_dim
    feature_dim = 16
    class_num = 10
    in_dim = C * H * W    # 1024 -> two Din tiles of 512 (exercises the accumulator)

    key = jax.random.PRNGKey(0)
    k_xi, k_xj, k_xw, k_p = jax.random.split(key, 4)
    x_i = jax.random.normal(k_xi, (B, C, H, W), jnp.float32)
    x_j = jax.random.normal(k_xj, (B, C, H, W), jnp.float32)
    x_w = jax.random.normal(k_xw, (B, C, H, W), jnp.float32)

    params = init_params(k_p, in_dim, rep_dim, feature_dim, class_num)
    prep = prepare_params(params, feature_dim, class_num, tk=512)

    fwd = jax.jit(
        functools.partial(network_forward, feature_dim=feature_dim,
                          class_num=class_num, tk=512)
    )
    outs = jax.block_until_ready(fwd(x_i, x_j, x_w, prep))
    z_i, z_j, z_w, c_i, c_j, c_w = outs

    # Shape and invariant checks.
    assert z_i.shape == (B, feature_dim) and c_i.shape == (B, class_num)
    assert z_w.shape == (B, feature_dim) and c_w.shape == (B, class_num)
    assert jnp.allclose(jnp.linalg.norm(z_i, axis=1), 1.0, atol=1e-2)
    assert jnp.allclose(jnp.sum(c_w, axis=1), 1.0, atol=1e-2)

    # Loose comparison against the f32 reference (kernel uses bf16 MXU inputs).
    ref = reference_forward(x_i, x_j, x_w, params)
    for got, want in zip(outs, ref):
        assert jnp.allclose(got, want, atol=5e-2, rtol=5e-2)

    print("KERNEL_OK")
</pallas_src>

<mosaic_0001>
module attributes {stable_mosaic.version = 11 : i64} {
  func.func @network_kernel(%arg0: i32, %arg1: i32, %arg2: memref<32x512xbf16, #tpu.memory_space<vmem>>, %arg3: memref<512x128xbf16, #tpu.memory_space<vmem>>, %arg4: memref<1x128xf32, #tpu.memory_space<vmem>>, %arg5: memref<128x256xbf16, #tpu.memory_space<vmem>>, %arg6: memref<1x256xf32, #tpu.memory_space<vmem>>, %arg7: memref<256x256xbf16, #tpu.memory_space<vmem>>, %arg8: memref<1x256xf32, #tpu.memory_space<vmem>>, %arg9: memref<32x256xf32, #tpu.memory_space<vmem>>, %arg10: memref<32x128xf32, #tpu.memory_space<vmem>>) attributes {dimension_semantics = [#tpu.dimension_semantics<parallel>, #tpu.dimension_semantics<arbitrary>], iteration_bounds = array<i64: 1, 2>, scalar_prefetch = 0 : i64, scratch_operands = 1 : i64, tpu.core_type = #tpu.core_type<tc>, window_params = [{transform_indices = @transform_0, window_bounds = array<i64: 32, 512>}, {transform_indices = @transform_1, window_bounds = array<i64: 512, 128>}, {pipeline_mode = #tpu.pipeline_mode<synchronous>, transform_indices = @transform_2, window_bounds = array<i64: 1, 128>}, {pipeline_mode = #tpu.pipeline_mode<synchronous>, transform_indices = @transform_3, window_bounds = array<i64: 128, 256>}, {pipeline_mode = #tpu.pipeline_mode<synchronous>, transform_indices = @transform_4, window_bounds = array<i64: 1, 256>}, {pipeline_mode = #tpu.pipeline_mode<synchronous>, transform_indices = @transform_5, window_bounds = array<i64: 256, 256>}, {pipeline_mode = #tpu.pipeline_mode<synchronous>, transform_indices = @transform_6, window_bounds = array<i64: 1, 256>}, {transform_indices = @transform_7, window_bounds = array<i64: 32, 256>}]} {
    %c0_i32 = arith.constant 0 : i32
    %0 = arith.cmpi eq, %arg1, %c0_i32 : i32
    %1 = arith.extui %0 : i1 to i32
    %c0_i32_0 = arith.constant 0 : i32
    %2 = arith.cmpi ne, %1, %c0_i32_0 : i32
    scf.if %2 {
      %cst_9 = arith.constant 0.000000e+00 : f32
      %12 = vector.broadcast %cst_9 : f32 to vector<32x128xf32>
      %c0_10 = arith.constant 0 : index
      %c0_11 = arith.constant 0 : index
      %13 = vector.load %arg10[%c0_10, %c0_11] : memref<32x128xf32, #tpu.memory_space<vmem>>, vector<32x128xf32>
      tpu.vector_store %arg10[%c0_10, %c0_11], %12 {strides = array<i32>} : memref<32x128xf32, #tpu.memory_space<vmem>>, vector<32x128xf32>,
    } else {
    }
    %c0 = arith.constant 0 : index
    %c0_1 = arith.constant 0 : index
    %3 = vector.load %arg10[%c0, %c0_1] : memref<32x128xf32, #tpu.memory_space<vmem>>, vector<32x128xf32>
    %c0_2 = arith.constant 0 : index
    %c0_3 = arith.constant 0 : index
    %4 = vector.load %arg2[%c0_2, %c0_3] : memref<32x512xbf16, #tpu.memory_space<vmem>>, vector<32x512xbf16>
    %c0_4 = arith.constant 0 : index
    %c0_5 = arith.constant 0 : index
    %5 = vector.load %arg3[%c0_4, %c0_5] : memref<512x128xbf16, #tpu.memory_space<vmem>>, vector<512x128xbf16>
    %cst = arith.constant dense<0.000000e+00> : vector<32x128xf32>
    %6 = tpu.matmul %4, %5, %cst {dimension_numbers = #tpu.dot_dimension_numbers<[1], [0], [0], [1], [0, 0, 1, 1], [], []>} : vector<32x512xbf16>, vector<512x128xbf16>, vector<32x128xf32> -> vector<32x128xf32>
    %7 = arith.addf %3, %6 : vector<32x128xf32>
    %c0_6 = arith.constant 0 : index
    %c0_7 = arith.constant 0 : index
    %8 = vector.load %arg10[%c0_6, %c0_7] : memref<32x128xf32, #tpu.memory_space<vmem>>, vector<32x128xf32>
    tpu.vector_store %arg10[%c0_6, %c0_7], %7 {strides = array<i32>} : memref<32x128xf32, #tpu.memory_space<vmem>>, vector<32x128xf32>,
    %c1_i32 = arith.constant 1 : i32
    %9 = arith.cmpi eq, %arg1, %c1_i32 : i32
    %10 = arith.extui %9 : i1 to i32
    %c0_i32_8 = arith.constant 0 : i32
    %11 = arith.cmpi ne, %10, %c0_i32_8 : i32
    scf.if %11 {
      %c0_9 = arith.constant 0 : index
      %c0_10 = arith.constant 0 : index
      %12 = vector.load %arg10[%c0_9, %c0_10] : memref<32x128xf32, #tpu.memory_space<vmem>>, vector<32x128xf32>
      %c0_11 = arith.constant 0 : index
      %c0_12 = arith.constant 0 : index
      %13 = vector.load %arg4[%c0_11, %c0_12] : memref<1x128xf32, #tpu.memory_space<vmem>>, vector<1x128xf32>
      %14 = vector.broadcast %13 : vector<1x128xf32> to vector<32x128xf32>
      %15 = arith.addf %12, %14 : vector<32x128xf32>
      %cst_13 = arith.constant 0.000000e+00 : f32
      %16 = vector.broadcast %cst_13 : f32 to vector<32x128xf32>
      %17 = arith.maximumf %15, %16 : vector<32x128xf32>
      %18 = arith.truncf %17 : vector<32x128xf32> to vector<32x128xbf16>
      %c0_14 = arith.constant 0 : index
      %c0_15 = arith.constant 0 : index
      %19 = vector.load %arg5[%c0_14, %c0_15] : memref<128x256xbf16, #tpu.memory_space<vmem>>, vector<128x256xbf16>
      %cst_16 = arith.constant dense<0.000000e+00> : vector<32x256xf32>
      %20 = tpu.matmul %18, %19, %cst_16 {dimension_numbers = #tpu.dot_dimension_numbers<[1], [0], [0], [1], [0, 0, 1, 1], [], []>} : vector<32x128xbf16>, vector<128x256xbf16>, vector<32x256xf32> -> vector<32x256xf32>
      %c0_17 = arith.constant 0 : index
      %c0_18 = arith.constant 0 : index
      %21 = vector.load %arg6[%c0_17, %c0_18] : memref<1x256xf32, #tpu.memory_space<vmem>>, vector<1x256xf32>
      %22 = vector.broadcast %21 : vector<1x256xf32> to vector<32x256xf32>
      %23 = arith.addf %20, %22 : vector<32x256xf32>
      %cst_19 = arith.constant 0.000000e+00 : f32
      %24 = vector.broadcast %cst_19 : f32 to vector<32x256xf32>
      %25 = arith.maximumf %23, %24 : vector<32x256xf32>
      %26 = arith.truncf %25 : vector<32x256xf32> to vector<32x256xbf16>
      %c0_20 = arith.constant 0 : index
      %c0_21 = arith.constant 0 : index
      %27 = vector.load %arg7[%c0_20, %c0_21] : memref<256x256xbf16, #tpu.memory_space<vmem>>, vector<256x256xbf16>
      %cst_22 = arith.constant dense<0.000000e+00> : vector<32x256xf32>
      %28 = tpu.matmul %26, %27, %cst_22 {dimension_numbers = #tpu.dot_dimension_numbers<[1], [0], [0], [1], [0, 0, 1, 1], [], []>} : vector<32x256xbf16>, vector<256x256xbf16>, vector<32x256xf32> -> vector<32x256xf32>
      %c0_23 = arith.constant 0 : index
      %c0_24 = arith.constant 0 : index
      %29 = vector.load %arg8[%c0_23, %c0_24] : memref<1x256xf32, #tpu.memory_space<vmem>>, vector<1x256xf32>
      %30 = vector.broadcast %29 : vector<1x256xf32> to vector<32x256xf32>
      %31 = arith.addf %28, %30 : vector<32x256xf32>
      %32 = vector.extract_strided_slice %31 {offsets = [0, 0], sizes = [32, 128], strides = [1, 1]} : vector<32x256xf32> to vector<32x128xf32>
      %33 = vector.extract_strided_slice %31 {offsets = [0, 128], sizes = [32, 128], strides = [1, 1]} : vector<32x256xf32> to vector<32x128xf32>
      %34 = arith.mulf %32, %32 : vector<32x128xf32>
      %cst_25 = arith.constant dense<0.000000e+00> : vector<32xf32>
      %35 = vector.multi_reduction <add>, %34, %cst_25 [1] : vector<32x128xf32> to vector<32xf32>
      %36 = vector.shape_cast %35 : vector<32xf32> to vector<32x1xf32>
      %cst_26 = arith.constant 1.000000e-24 : f32
      %37 = vector.broadcast %cst_26 : f32 to vector<32x1xf32>
      %38 = arith.maximumf %36, %37 : vector<32x1xf32>
      %39 = math.rsqrt %38 : vector<32x1xf32>
      %40 = vector.broadcast %39 : vector<32x1xf32> to vector<32x128xf32>
      %41 = arith.mulf %32, %40 : vector<32x128xf32>
      %c0_27 = arith.constant 0 : index
      %c0_28 = arith.constant 0 : index
      %42 = vector.load %arg9[%c0_27, %c0_28] : memref<32x256xf32, #tpu.memory_space<vmem>>, vector<32x128xf32>
      tpu.vector_store %arg9[%c0_27, %c0_28], %41 {strides = array<i32>} : memref<32x256xf32, #tpu.memory_space<vmem>>, vector<32x128xf32>,
      %cst_29 = arith.constant dense<0xFF800000> : vector<32xf32>
      %43 = vector.multi_reduction <maximumf>, %33, %cst_29 [1] : vector<32x128xf32> to vector<32xf32>
      %44 = vector.shape_cast %43 : vector<32xf32> to vector<32x1xf32>
      %45 = vector.broadcast %44 : vector<32x1xf32> to vector<32x128xf32>
      %46 = arith.subf %33, %45 : vector<32x128xf32>
      %47 = math.exp %46 : vector<32x128xf32>
      %cst_30 = arith.constant dense<0.000000e+00> : vector<32xf32>
      %48 = vector.multi_reduction <add>, %47, %cst_30 [1] : vector<32x128xf32> to vector<32xf32>
      %49 = vector.shape_cast %48 : vector<32xf32> to vector<32x1xf32>
      %50 = tpu.reciprocal %49 {approx = true} : vector<32x1xf32> -> vector<32x1xf32>
      %51 = vector.broadcast %50 : vector<32x1xf32> to vector<32x128xf32>
      %52 = arith.mulf %47, %51 : vector<32x128xf32>
      %c0_31 = arith.constant 0 : index
      %c128 = arith.constant 128 : index
      %53 = vector.load %arg9[%c0_31, %c128] : memref<32x256xf32, #tpu.memory_space<vmem>>, vector<32x128xf32>
      tpu.vector_store %arg9[%c0_31, %c128], %52 {strides = array<i32>} : memref<32x256xf32, #tpu.memory_space<vmem>>, vector<32x128xf32>,
    } else {
    }
    return
  }
  func.func @transform_0(%arg0: i32, %arg1: i32) -> (i32, i32) {
    %c0_i32 = arith.constant 0 : i32
    return %arg0, %arg1 : i32, i32
  }
  func.func @transform_1(%arg0: i32, %arg1: i32) -> (i32, i32) {
    %c0_i32 = arith.constant 0 : i32
    %c0_i32_0 = arith.constant 0 : i32
    return %arg1, %c0_i32 : i32, i32
  }
  func.func @transform_2(%arg0: i32, %arg1: i32) -> (i32, i32) {
    %c0_i32 = arith.constant 0 : i32
    %c0_i32_0 = arith.constant 0 : i32
    %c0_i32_1 = arith.constant 0 : i32
    return %c0_i32, %c0_i32_0 : i32, i32
  }
  func.func @transform_3(%arg0: i32, %arg1: i32) -> (i32, i32) {
    %c0_i32 = arith.constant 0 : i32
    %c0_i32_0 = arith.constant 0 : i32
    %c0_i32_1 = arith.constant 0 : i32
    return %c0_i32, %c0_i32_0 : i32, i32
  }
  func.func @transform_4(%arg0: i32, %arg1: i32) -> (i32, i32) {
    %c0_i32 = arith.constant 0 : i32
    %c0_i32_0 = arith.constant 0 : i32
    %c0_i32_1 = arith.constant 0 : i32
    return %c0_i32, %c0_i32_0 : i32, i32
  }
  func.func @transform_5(%arg0: i32, %arg1: i32) -> (i32, i32) {
    %c0_i32 = arith.constant 0 : i32
    %c0_i32_0 = arith.constant 0 : i32
    %c0_i32_1 = arith.constant 0 : i32
    return %c0_i32, %c0_i32_0 : i32, i32
  }
  func.func @transform_6(%arg0: i32, %arg1: i32) -> (i32, i32) {
    %c0_i32 = arith.constant 0 : i32
    %c0_i32_0 = arith.constant 0 : i32
    %c0_i32_1 = arith.constant 0 : i32
    return %c0_i32, %c0_i32_0 : i32, i32
  }
  func.func @transform_7(%arg0: i32, %arg1: i32) -> (i32, i32) {
    %c0_i32 = arith.constant 0 : i32
    %c0_i32_0 = arith.constant 0 : i32
    return %arg0, %c0_i32 : i32, i32
  }
}

</mosaic_0001>

<bundles_post_ra>
// kernel: network_forward.1
= control target key start
LH: loop header
LB: loop body
LE: loop exit
PB: predicated region body
PF: predicated region fallthrough
CT: control target
= control target key end

     0   :  { %s1814_s24 = smov 0   ;;  %s1816_s25 = smov 0   ;;  %s2104_s0 = inlined_call_operand.vmem [shape: bf16[32,1024], index: 0, kind: input, shape index: {}]   ;;  %s2105_s1 = inlined_call_operand.vmem [shape: bf16[1024,128], index: 1, kind: input, shape index: {}]   ;;  %s2106_s2 = inlined_call_operand.vmem [shape: f32[1,128], index: 2, kind: input, shape index: {}]   ;;  %s2107_s3 = inlined_call_operand.vmem [shape: bf16[128,256], index: 3, kind: input, shape index: {}]   ;;  %s2108_s4 = inlined_call_operand.vmem [shape: f32[1,256], index: 4, kind: input, shape index: {}]   ;;  %s2109_s5 = inlined_call_operand.vmem [shape: bf16[256,256], index: 5, kind: input, shape index: {}]   ;;  %s2110_s6 = inlined_call_operand.vmem [shape: f32[1,256], index: 6, kind: input, shape index: {}]   ;;  %s2111_s7 = inlined_call_operand.vmem [shape: f32[32,256], index: 7, kind: output, shape index: {}]  }
   0x1   :  { %s1818_s26 = smov 0   ;;  %s1820_s27 = smov 0  }
   0x2   :  { %s1822_s28 = smov 0  }
   0x3 LB: > { %s26_s29 = sadd.s32 1, %s1766_s27  ;;  %p45_p1 = scmp.ne.s32.totalorder %s1758_s25, %s1754_s24  ;;  %s1770_s28 = sphi %s1822_s28, %s17_s28   ;;  %s1766_s27 = sphi %s1820_s27, %s2115_s27   ;;  %s1762_s26 = sphi %s1818_s26, %s2114_s26   ;;  %s1758_s25 = sphi %s1816_s25, %s2113_s25   ;;  %s1754_s24 = sphi %s1814_s24, %s2112_s24  }
   0x4   : > { %p27_p0 = scmp.ge.s32.totalorder %s26_s29, 2  ;;  %p46_p2 = scmp.eq.s32.totalorder %s1770_s28, 0 }
   0x5   : > { %s38_s8 = sadd.s32 1, %s1758_s25  ;;  %p1390_p5 = scmp.ge.s32.totalorder %s1770_s28, 2 }
   0x6   : > { %s2117_s29 = smov (%p27_p0, %s26_s29), 0  ;;  %p47_p3 = por %p46_p2, %p45_p1 }
   0x7   : > { %s34_s30 = ssub.s32 %s1766_s27, %s2117_s29  ;;  %243 = sbr.rel (%p1390_p5) target bundleno = 22 (0x16), region = 36 }
   0x8   : > { %p36_p4 = scmp.eq.s32.totalorder %s34_s30, 0 }
   0xa   : > { %s1849_s9 = scalar_select %p36_p4, %s1758_s25, %s38_s8  }
   0xe   : > { %246 = sbr.rel (!%p47_p3) target bundleno = 22 (0x16), region = 40  ;;  %s248_s10 = sand.u32 (%p47_p3), 1, %s1758_s25  }
   0xf   : > { %s1493_s11 = sshll.u32 (%p47_p3), %s1766_s27, 4  ;;  %s1391_s12 = sshll.u32 (%p47_p3), %s248_s10, 6 }
  0x10   : > { %s256_s15 = scalar_lea.vmem (%p47_p3), %s2104_s0, %s1493_s11  ;;  %s250_s16 = scalar_lea.vmem (%p47_p3), [#allocation3], %s1391_s12 }
  0x11   : > { %v269_v0 = vld [vmem:[%s256_s15] sm:$0xff] (%p47_p3)  ;;  %v271_v1 = vld [vmem:[%s256_s15 + $0x8] sm:$0xff] (%p47_p3) }
  0x12   : > { %v273_v2 = vld [vmem:[%s256_s15 + $0x20] sm:$0xff] (%p47_p3)  ;;  %270 = vst [vmem:[%s250_s16] sm:$0xff] (%p47_p3), %v269_v0  ;;  %272 = vst [vmem:[%s250_s16 + $0x8] sm:$0xff] (%p47_p3), %v271_v1  ;;  %v275_v3 = vld [vmem:[%s256_s15 + $0x28] sm:$0xff] (%p47_p3) }
  0x13   : > { %274 = vst [vmem:[%s250_s16 + $0x10] sm:$0xff] (%p47_p3), %v273_v2  ;;  %v277_v4 = vld [vmem:[%s256_s15 + $0x40] sm:$0xff] (%p47_p3)  ;;  %v279_v5 = vld [vmem:[%s256_s15 + $0x48] sm:$0xff] (%p47_p3)  ;;  %276 = vst [vmem:[%s250_s16 + $0x18] sm:$0xff] (%p47_p3), %v275_v3 }
  0x14   : > { %278 = vst [vmem:[%s250_s16 + $0x20] sm:$0xff] (%p47_p3), %v277_v4  ;;  %280 = vst [vmem:[%s250_s16 + $0x28] sm:$0xff] (%p47_p3), %v279_v5  ;;  %v281_v6 = vld [vmem:[%s256_s15 + $0x60] sm:$0xff] (%p47_p3)  ;;  %v283_v7 = vld [vmem:[%s256_s15 + $0x68] sm:$0xff] (%p47_p3) }
  0x15   : > { %282 = vst [vmem:[%s250_s16 + $0x30] sm:$0xff] %v281_v6  ;;  %284 = vst [vmem:[%s250_s16 + $0x38] sm:$0xff] %v283_v7 }
  0x16 PF: > { %p1394_p6 = scmp.ge.s32.totalorder %s1770_s28, 1  ;;  %p298_p7 = scmp.lt.s32.totalorder %s1770_s28, 3 }
  0x18   : > { %p299_p8 = pnand %p1394_p6, %p298_p7 }
  0x19   : > { %s305_s17 = sand.u32 (!%p299_p8), 1, %s1754_s24   ;;  %s1396_s18 = sshll.u32 (!%p299_p8), %s1762_s26, 6 }
  0x1a   : > { %302 = sbr.rel (%p299_p8) target bundleno = 1072 (0x430), region = 67  ;;  %s1395_s19 = sshll.u32 (!%p299_p8), %s305_s17, 6 }
  0x1b   : > { %p345_p9 = scmp.lt.s32.totalorder (!%p299_p8), %s1396_s18, 127  ;;  %s1866_s30 = scalar_lea.vmem (!%p299_p8), [#allocation3], %s1395_s19 }
  0x1c   : > { %p1398_p10 = scmp.ne.s32.totalorder (!%p299_p8), %s1762_s26, 0 }
  0x21   : > { %s2119_s18 = smov (!%p345_p9, %s1396_s18), 127  ;;  %361 = sbr.rel (%p1398_p10) target bundleno = 40 (0x28), region = 75 }
  0x22   : > { %s1397_s20 = sshll.u32 %s2119_s18, 2  ;;  %v1772_v8 = vmov (!%p1398_p10), 0.0  }
  0x23   : > { %s1864_s23 = scalar_lea.vmem %s2105_s1, %s1397_s20  ;;  %362 = vst [vmem:[#allocation2] sm:$0xff] (!%p1398_p10), %v1772_v8  ;;  %363 = vst [vmem:[#allocation2 + $0x8] sm:$0xff] (!%p1398_p10), %v1772_v8 }
  0x24   : > { %364 = vst [vmem:[#allocation2 + $0x10] sm:$0xff] (!%p1398_p10), %v1772_v8  ;;  %365 = vst [vmem:[#allocation2 + $0x18] sm:$0xff] (!%p1398_p10), %v1772_v8 }
  0x28 PF: > { %v1592_v9 = vld [vmem:[%s1864_s23 + $0x40] sm:$0xff]   ;;  %v1596_v13 = vld [vmem:[%s1864_s23 + $0x48] sm:$0xff]   ;;  %v1600_v17 = vld [vmem:[%s1864_s23 + $0x50] sm:$0xff]   ;;  %p1439_p11 = scmp.ne.s32.totalorder %s1762_s26, 1 }
  0x29   : > { %v1593_v10 = vld [vmem:[%s1864_s23 + $0xc0] sm:$0xff]   ;;  %1494 = vmatprep.subr.bf16.mxu0 %v1592_v9  ;;  %v1597_v14 = vld [vmem:[%s1864_s23 + $0xc8] sm:$0xff]   ;;  %v1601_v18 = vld [vmem:[%s1864_s23 + $0xd0] sm:$0xff]  }
  0x2a   : > { %v1594_v11 = vld [vmem:[%s1864_s23] sm:$0xff]   ;;  %1522 = vmatprep.subr.bf16.mxu1 %v1593_v10  ;;  %v1598_v15 = vld [vmem:[%s1864_s23 + $0x8] sm:$0xff]   ;;  %v1602_v19 = vld [vmem:[%s1864_s23 + $0x10] sm:$0xff]  }
  0x2b   : > { %v1595_v12 = vld [vmem:[%s1864_s23 + $0x80] sm:$0xff]   ;;  %1495 = vmatpush3.bf16.msra.mxu0 %v1594_v11  ;;  %v1599_v16 = vld [vmem:[%s1864_s23 + $0x88] sm:$0xff]   ;;  %v1603_v20 = vld [vmem:[%s1864_s23 + $0x90] sm:$0xff]  }
  0x2c   : > { %1523 = vmatpush3.bf16.msra.mxu1 %v1595_v12  ;;  %1496 = vmatprep.subr.bf16.mxu0 %v1596_v13  ;;  %v1604_v21 = vld [vmem:[%s1864_s23 + $0x58] sm:$0xff]   ;;  %v1608_v25 = vld [vmem:[%s1864_s23 + $0x60] sm:$0xff]   ;;  %v1612_v29 = vld [vmem:[%s1864_s23 + $0x68] sm:$0xff]  }
  0x2d   : > { %1524 = vmatprep.subr.bf16.mxu1 %v1597_v14  ;;  %v1605_v22 = vld [vmem:[%s1864_s23 + $0xd8] sm:$0xff]   ;;  %v1609_v26 = vld [vmem:[%s1864_s23 + $0xe0] sm:$0xff]   ;;  %v1613_v30 = vld [vmem:[%s1864_s23 + $0xe8] sm:$0xff]  }
  0x2e   : > { %v1606_v23 = vld [vmem:[%s1864_s23 + $0x18] sm:$0xff]   ;;  %v1610_v27 = vld [vmem:[%s1864_s23 + $0x20] sm:$0xff]   ;;  %v1614_v31 = vld [vmem:[%s1864_s23 + $0x28] sm:$0xff]  }
  0x2f   : > { %1497 = vmatpush3.bf16.msra.mxu0 %v1598_v15  ;;  %v1607_v24 = vld [vmem:[%s1864_s23 + $0x98] sm:$0xff]   ;;  %v1611_v28 = vld [vmem:[%s1864_s23 + $0xa0] sm:$0xff]   ;;  %v1615_v32 = vld [vmem:[%s1864_s23 + $0xa8] sm:$0xff]  }
  0x30   : > { %1525 = vmatpush3.bf16.msra.mxu1 %v1599_v16  ;;  %1498 = vmatprep.subr.bf16.mxu0 %v1600_v17  ;;  %v1616_v33 = vld [vmem:[%s1864_s23 + $0x70] sm:$0xff]   ;;  %v1620_v37 = vld [vmem:[%s1864_s23 + $0x78] sm:$0xff]   ;;  %v366_v58 = vld [vmem:[#allocation2] sm:$0xff] }
  0x31   : > { %1526 = vmatprep.subr.bf16.mxu1 %v1601_v18  ;;  %v1617_v34 = vld [vmem:[%s1864_s23 + $0xf0] sm:$0xff]   ;;  %v1621_v38 = vld [vmem:[%s1864_s23 + $0xf8] sm:$0xff]   ;;  %v367_v63 = vld [vmem:[#allocation2 + $0x8] sm:$0xff] }
  0x32   : > { %v1618_v35 = vld [vmem:[%s1864_s23 + $0x30] sm:$0xff]   ;;  %v1622_v39 = vld [vmem:[%s1864_s23 + $0x38] sm:$0xff]  }
  0x33   : > { %1499 = vmatpush3.bf16.msra.mxu0 %v1602_v19  ;;  %v1619_v36 = vld [vmem:[%s1864_s23 + $0xb0] sm:$0xff]   ;;  %v1623_v40 = vld [vmem:[%s1864_s23 + $0xb8] sm:$0xff]  }
  0x34   : > { %1527 = vmatpush3.bf16.msra.mxu1 %v1603_v20  ;;  %1500 = vmatprep.subr.bf16.mxu0 %v1604_v21  ;;  %v1624_v41 = vld [vmem:[%s1866_s30] ss:$16 sps:$4 sm:$0xff]   ;;  %v1626_v42 = vld [vmem:[%s1866_s30 + $0x4] ss:$16 sps:$4 sm:$0xff]   ;;  %v1627_v43 = vld [vmem:[%s1866_s30 + $0x8] ss:$16 sps:$4 sm:$0xff]  }
  0x35   : > { %1528 = vmatprep.subr.bf16.mxu1 %v1605_v22  ;;  %v1629_v44 = vld [vmem:[%s1866_s30 + $0xc] ss:$16 sps:$4 sm:$0xff]   ;;  %706 = vmatprep.mubr.bf16.mxu0 %v1626_v42  ;;  %v1630_v45 = vld [vmem:[%s1866_s30 + $0x24] ss:$16 sps:$4 sm:$0xff]   ;;  %v1634_v47 = vld [vmem:[%s1866_s30 + $0x20] ss:$16 sps:$4 sm:$0xff]  }
  0x36   : > { %755 = vmatprep.mubr.bf16.mxu1 %v1629_v44  ;;  %v1632_v46 = vld [vmem:[%s1866_s30 + $0x2c] ss:$16 sps:$4 sm:$0xff]   ;;  %v1635_v48 = vld [vmem:[%s1866_s30 + $0x28] ss:$16 sps:$4 sm:$0xff]   ;;  %v368_v12 = vld [vmem:[#allocation2 + $0x10] sm:$0xff] }
  0x37   : > { %1501 = vmatpush3.bf16.msra.mxu0 %v1606_v23  ;;  %v369_v17 = vld [vmem:[#allocation2 + $0x18] sm:$0xff]  ;;  %v1636_v21 = vld [vmem:[%s2107_s3 + $0x4] ss:$8 sps:$4 sm:$0xff] (!%p1439_p11)   ;;  %v1638_v22 = vld [vmem:[%s2107_s3] ss:$8 sps:$4 sm:$0xff] (!%p1439_p11)   ;;  %v1773_v23 = vmov (!%p1439_p11), 0  }
  0x38   : > { %1529 = vmatpush3.bf16.msra.mxu1 %v1607_v24  ;;  %1502 = vmatprep.subr.bf16.mxu0 %v1608_v25  ;;  %v1639_v24 = vld [vmem:[%s2107_s3 + $0x14] ss:$8 sps:$4 sm:$0xff] (!%p1439_p11)   ;;  %v1641_v25 = vld [vmem:[%s2107_s3 + $0x10] ss:$8 sps:$4 sm:$0xff] (!%p1439_p11)   ;;  %v1654_v42 = vld [vmem:[%s2107_s3 + $0x64] ss:$8 sps:$4 sm:$0xff] (!%p1439_p11)  }
  0x39   : > { %1530 = vmatprep.subr.bf16.mxu1 %v1609_v26  ;;  %v1642_v26 = vld [vmem:[%s2107_s3 + $0x24] ss:$8 sps:$4 sm:$0xff] (!%p1439_p11)   ;;  %v1669_v44 = vld [vmem:[%s2109_s5 + $0x34] ss:$8 sps:$4 sm:$0xff] (!%p1439_p11)  }
  0x3b   : > { %1503 = vmatpush3.bf16.msra.mxu0 %v1610_v27  ;;  %v1644_v27 = vld [vmem:[%s2107_s3 + $0x20] ss:$8 sps:$4 sm:$0xff] (!%p1439_p11)  }
  0x3c   : > { %1531 = vmatpush3.bf16.msra.mxu1 %v1611_v28  ;;  %1504 = vmatprep.subr.bf16.mxu0 %v1612_v29  ;;  %v1645_v28 = vld [vmem:[%s2107_s3 + $0x34] ss:$8 sps:$4 sm:$0xff] (!%p1439_p11)   ;;  %v1647_v29 = vld [vmem:[%s2107_s3 + $0x30] ss:$8 sps:$4 sm:$0xff] (!%p1439_p11)  }
  0x3d   : > { %1532 = vmatprep.subr.bf16.mxu1 %v1613_v30  ;;  %v1648_v30 = vld [vmem:[%s2107_s3 + $0x44] ss:$8 sps:$4 sm:$0xff] (!%p1439_p11)  }
  0x3f   : > { %1505 = vmatpush3.bf16.msra.mxu0 %v1614_v31  ;;  %v1660_v31 = vld [vmem:[%s2109_s5 + $0x4] ss:$8 sps:$4 sm:$0xff] (!%p1439_p11)  }
  0x40   : > { %1533 = vmatpush3.bf16.msra.mxu1 %v1615_v32  ;;  %1506 = vmatprep.subr.bf16.mxu0 %v1616_v33  ;;  %v1662_v32 = vld [vmem:[%s2109_s5] ss:$8 sps:$4 sm:$0xff] (!%p1439_p11)   ;;  %v1663_v33 = vld [vmem:[%s2109_s5 + $0x14] ss:$8 sps:$4 sm:$0xff] (!%p1439_p11)  }
  0x41   : > { %1534 = vmatprep.subr.bf16.mxu1 %v1617_v34  ;;  %v1650_v34 = vld [vmem:[%s2107_s3 + $0x40] ss:$8 sps:$4 sm:$0xff] (!%p1439_p11)  }
  0x43   : > { %1507 = vmatpush3.bf16.msra.mxu0 %v1618_v35  ;;  %v1651_v35 = vld [vmem:[%s2107_s3 + $0x54] ss:$8 sps:$4 sm:$0xff] (!%p1439_p11)  }
  0x44   : > { %1535 = vmatpush3.bf16.msra.mxu1 %v1619_v36  ;;  %1508 = vmatprep.subr.bf16.mxu0 %v1620_v37  ;;  %v1665_v36 = vld [vmem:[%s2109_s5 + $0x10] ss:$8 sps:$4 sm:$0xff] (!%p1439_p11)  }
  0x45   : > { %1536 = vmatprep.subr.bf16.mxu1 %v1621_v38  ;;  %v1653_v37 = vld [vmem:[%s2107_s3 + $0x50] ss:$8 sps:$4 sm:$0xff] (!%p1439_p11)  }
  0x47   : > { %1509 = vmatpush3.bf16.msra.mxu0 %v1622_v39  ;;  %v1666_v39 = vld [vmem:[%s2109_s5 + $0x24] ss:$8 sps:$4 sm:$0xff] (!%p1439_p11)  }
  0x48   : > { %1537 = vmatpush3.bf16.msra.mxu1 %v1623_v40  ;;  %913 = vmatprep.subr.bf16.mxu0 (!%p1439_p11), %v1636_v21  ;;  %v823_v21 = vlaneseq (!%p1439_p11) }
  0x49   : > { %1182 = vmatprep.subr.bf16.mxu1 (!%p1439_p11), %v1660_v31 }
  0x4a   : > { %707 = vmatmul.mubr.bf16.vlgmr.msra.gmra.mrb[0].mxu0 %v1624_v41  ;;  %v1440_v41 = vld [vmem:[%s2106_s2] ss:$0 sm:$0xff] (!%p1439_p11) }
  0x4b   : > { %756 = vmatmul.mubr.bf16.vlgmr.msra.gmra.mrb[0].mxu1 %v1627_v43  ;;  %714 = vmatprep.mubr.bf16.mxu0 %v1630_v45  ;;  %v1668_v43 = vld [vmem:[%s2109_s5 + $0x20] ss:$8 sps:$4 sm:$0xff] (!%p1439_p11)  }
  0x4c   : > { %763 = vmatprep.mubr.bf16.mxu1 %v1632_v46  ;;  %914 = vmatpush1.bf16.msra.mxu0 (!%p1439_p11), %v1638_v22  ;;  %v824_v22 = vshrl.u32 (!%p1439_p11), %v823_v21, 7 }
  0x4d   : > { %915 = vmatprep.subr.bf16.mxu0 (!%p1439_p11), %v1639_v24  ;;  %1183 = vmatpush1.bf16.msra.mxu1 (!%p1439_p11), %v1662_v32  ;;  %v821_v24 = vld [vmem:[%s2108_s4] sm:$0x3] (!%p1439_p11) }
  0x4e   : > { %1184 = vmatprep.subr.bf16.mxu1 (!%p1439_p11), %v1663_v33 }
  0x50   : > { %916 = vmatpush1.bf16.msra.mxu0 (!%p1439_p11), %v1641_v25  ;;  %v829_v25 = vsub.s32 (!%p1439_p11), 1, %v824_v22 }
  0x51   : > { %917 = vmatprep.subr.bf16.mxu0 (!%p1439_p11), %v1642_v26  ;;  %1185 = vmatpush1.bf16.msra.mxu1 (!%p1439_p11), %v1665_v36 }
  0x52   : > { %715 = vmatmul.mubr.bf16.gmra.mrb[4].mxu0 %v1634_v47  ;;  %1186 = vmatprep.subr.bf16.mxu1 (!%p1439_p11), %v1666_v39  ;;  %v1656_v47 = vld [vmem:[%s2107_s3 + $0x60] ss:$8 sps:$4 sm:$0xff] (!%p1439_p11)  }
  0x53   : > { %764 = vmatmul.mubr.bf16.gmra.mrb[4].mxu1 %v1635_v48  ;;  %945 = vmatprep.mubr.bf16.mxu0 (!%p1439_p11), %v1773_v23  ;;  %v1657_v48 = vld [vmem:[%s2107_s3 + $0x74] ss:$8 sps:$4 sm:$0xff] (!%p1439_p11)  }
  0x54   : > { %918 = vmatpush1.bf16.msra.mxu0 (!%p1439_p11), %v1644_v27  ;;  %v830_v27 = vrot.slane (!%p1439_p11), %v821_v24, %v829_v25 }
  0x55   : > { %919 = vmatprep.subr.bf16.mxu0 (!%p1439_p11), %v1645_v28  ;;  %1187 = vmatpush1.bf16.msra.mxu1 (!%p1439_p11), %v1668_v43 }
  0x56   : > { %1188 = vmatprep.subr.bf16.mxu1 (!%p1439_p11), %v1669_v44 }
  0x58   : > { %920 = vmatpush1.bf16.msra.mxu0 (!%p1439_p11), %v1647_v29 }
  0x59   : > { %921 = vmatprep.subr.bf16.mxu0 (!%p1439_p11), %v1648_v30 }
  0x5c   : > { %922 = vmatpush1.bf16.msra.mxu0 (!%p1439_p11), %v1650_v34 }
  0x5d   : > { %923 = vmatprep.subr.bf16.mxu0 (!%p1439_p11), %v1651_v35 }
  0x60   : > { %924 = vmatpush1.bf16.msra.mxu0 (!%p1439_p11), %v1653_v37 }
  0x61   : > { %925 = vmatprep.subr.bf16.mxu0 (!%p1439_p11), %v1654_v42 }
  0x64   : > { %926 = vmatpush1.bf16.msra.mxu0 (!%p1439_p11), %v1656_v47 }
  0x65   : > { %927 = vmatprep.subr.bf16.mxu0 (!%p1439_p11), %v1657_v48 }
 0x11d   : > { %v1510_v49 = vpop.f32.mrb[0].mxu0 }
 0x11e   : > { %v1538_v50 = vpop.f32.mrb[0].mxu1  ;;  %v1511_v51 = vpop.f32.mrb[1].mxu0 }
 0x11f   : > { %v1512_v52 = vadd.f32 %v1511_v51, %v1510_v49  ;;  %v1539_v53 = vpop.f32.mrb[1].mxu1  ;;  %v1513_v54 = vpop.f32.mrb[2].mxu0  ;;  %v1671_v49 = vld [vmem:[%s2109_s5 + $0x30] ss:$8 sps:$4 sm:$0xff] (!%p1439_p11)   ;;  %v1672_v51 = vld [vmem:[%s2109_s5 + $0x44] ss:$8 sps:$4 sm:$0xff] (!%p1439_p11)  }
 0x120   : > { %v1540_v55 = vadd.f32 %v1539_v53, %v1538_v50  ;;  %v1541_v56 = vpop.f32.mrb[2].mxu1  ;;  %v1514_v57 = vpop.f32.mrb[3].mxu0  ;;  %v1659_v50 = vld [vmem:[%s2107_s3 + $0x70] ss:$8 sps:$4 sm:$0xff] (!%p1439_p11)   ;;  %1189 = vmatpush1.bf16.msra.mxu1 (!%p1439_p11), %v1671_v49 }
 0x121   : > { %v1515_v59 = vadd.f32 %v1514_v57, %v1513_v54  ;;  %v1542_v60 = vpop.f32.mrb[3].mxu1  ;;  %1190 = vmatprep.subr.bf16.mxu1 (!%p1439_p11), %v1672_v51  ;;  %v1675_v57 = vld [vmem:[%s2109_s5 + $0x54] ss:$8 sps:$4 sm:$0xff] (!%p1439_p11)   ;;  %928 = vmatpush1.bf16.msra.mxu0 (!%p1439_p11), %v1659_v50 }
 0x122   : > { %v758_v61 = vadd.f32 %v1540_v55, %v1512_v52  ;;  %v1543_v62 = vadd.f32 %v1542_v60, %v1541_v56  ;;  %v1674_v56 = vld [vmem:[%s2109_s5 + $0x40] ss:$8 sps:$4 sm:$0xff] (!%p1439_p11)  }
 0x124   : > { %v772_v0 = vadd.f32 %v758_v61, %v366_v58  ;;  %v761_v1 = vadd.f32 %v1543_v62, %v1515_v59  ;;  %1191 = vmatpush1.bf16.msra.mxu1 (!%p1439_p11), %v1674_v56  ;;  %v1677_v61 = vld [vmem:[%s2109_s5 + $0x50] ss:$8 sps:$4 sm:$0xff] (!%p1439_p11)   ;;  %v1678_v62 = vld [vmem:[%s2109_s5 + $0x64] ss:$8 sps:$4 sm:$0xff] (!%p1439_p11)   ;;  %v1010_v56 = vld [vmem:[%s2110_s6] sm:$0x3] (!%p1439_p11) }
 0x125   : > { %v1516_v2 = vpop.f32.mrb[4].mxu0  ;;  %1192 = vmatprep.subr.bf16.mxu1 (!%p1439_p11), %v1675_v57  ;;  %v1019_v57 = vrot.slane (!%p1439_p11), %v1010_v56, %v829_v25 }
 0x126   : > { %776 = vst [vmem:[#allocation2] sm:$0xff] %v772_v0  ;;  %v773_v3 = vadd.f32 %v761_v1, %v367_v63  ;;  %v1544_v4 = vpop.f32.mrb[4].mxu1  ;;  %v1517_v5 = vpop.f32.mrb[5].mxu0  ;;  %v1680_v1 = vld [vmem:[%s2109_s5 + $0x60] ss:$8 sps:$4 sm:$0xff] (!%p1439_p11)  }
 0x127   : > { %v1518_v6 = vadd.f32 %v1517_v5, %v1516_v2  ;;  %v1545_v7 = vpop.f32.mrb[5].mxu1  ;;  %v1519_v8 = vpop.f32.mrb[6].mxu0  ;;  %v1681_v2 = vld [vmem:[%s2109_s5 + $0x74] ss:$8 sps:$4 sm:$0xff] (!%p1439_p11)   ;;  %v1684_v5 = vld [vmem:[%s2109_s5 + $0x84] ss:$8 sps:$4 sm:$0xff] (!%p1439_p11)  }
 0x128   : > { %777 = vst [vmem:[#allocation2 + $0x8] sm:$0xff] %v773_v3  ;;  %v1546_v9 = vadd.f32 %v1545_v7, %v1544_v4  ;;  %v1547_v10 = vpop.f32.mrb[6].mxu1  ;;  %v1520_v11 = vpop.f32.mrb[7].mxu0  ;;  %1193 = vmatpush1.bf16.msra.mxu1 (!%p1439_p11), %v1677_v61  ;;  %v1683_v4 = vld [vmem:[%s2109_s5 + $0x70] ss:$8 sps:$4 sm:$0xff] (!%p1439_p11)  }
 0x129   : > { %v1521_v13 = vadd.f32 %v1520_v11, %v1519_v8  ;;  %v1548_v14 = vpop.f32.mrb[7].mxu1  ;;  %1194 = vmatprep.subr.bf16.mxu1 (!%p1439_p11), %v1678_v62  ;;  %v1687_v7 = vld [vmem:[%s2109_s5 + $0x94] ss:$8 sps:$4 sm:$0xff] (!%p1439_p11)   ;;  %v1689_v8 = vld [vmem:[%s2109_s5 + $0x90] ss:$8 sps:$4 sm:$0xff] (!%p1439_p11)  }
 0x12a   : > { %v766_v15 = vadd.f32 %v1546_v9, %v1518_v6  ;;  %v1549_v16 = vadd.f32 %v1548_v14, %v1547_v10  ;;  %783 = sbr.rel (%p1439_p11) target bundleno = 1072 (0x430), region = 79  ;;  %v1686_v6 = vld [vmem:[%s2109_s5 + $0x80] ss:$8 sps:$4 sm:$0xff] (!%p1439_p11)   ;;  %v1690_v9 = vld [vmem:[%s2109_s5 + $0xa4] ss:$8 sps:$4 sm:$0xff] (!%p1439_p11)  }
 0x12b   : > { %v1692_v10 = vld [vmem:[%s2109_s5 + $0xa0] ss:$8 sps:$4 sm:$0xff] (!%p1439_p11)   ;;  %v1693_v11 = vld [vmem:[%s2109_s5 + $0xb4] ss:$8 sps:$4 sm:$0xff] (!%p1439_p11)  }
 0x12c   : > { %v774_v18 = vadd.f32 %v766_v15, %v368_v12  ;;  %v769_v19 = vadd.f32 %v1549_v16, %v1521_v13  ;;  %1195 = vmatpush1.bf16.msra.mxu1 (!%p1439_p11), %v1680_v1  ;;  %v1695_v12 = vld [vmem:[%s2109_s5 + $0xb0] ss:$8 sps:$4 sm:$0xff] (!%p1439_p11)   ;;  %v1696_v13 = vld [vmem:[%s2109_s5 + $0xc4] ss:$8 sps:$4 sm:$0xff] (!%p1439_p11)   ;;  %v1698_v14 = vld [vmem:[%s2109_s5 + $0xc0] ss:$8 sps:$4 sm:$0xff] (!%p1439_p11)  }
 0x12d   : > { %v784_v38 = vld [vmem:[#allocation2] sm:$0xff] (!%p1439_p11)  ;;  %1196 = vmatprep.subr.bf16.mxu1 (!%p1439_p11), %v1681_v2  ;;  %v1699_v15 = vld [vmem:[%s2109_s5 + $0xd4] ss:$8 sps:$4 sm:$0xff] (!%p1439_p11)   ;;  %v1701_v16 = vld [vmem:[%s2109_s5 + $0xd0] ss:$8 sps:$4 sm:$0xff] (!%p1439_p11)  }
 0x12e   : > { %778 = vst [vmem:[#allocation2 + $0x10] sm:$0xff] %v774_v18  ;;  %v775_v20 = vadd.f32 %v769_v19, %v369_v17  ;;  %v795_v45 = vadd.f32 (!%p1439_p11), %v1440_v41, %v784_v38  ;;  %v1702_v17 = vld [vmem:[%s2109_s5 + $0xe4] ss:$8 sps:$4 sm:$0xff] (!%p1439_p11)   ;;  %v1704_v18 = vld [vmem:[%s2109_s5 + $0xe0] ss:$8 sps:$4 sm:$0xff] (!%p1439_p11)  }
 0x12f   : > { %v785_v40 = vld [vmem:[#allocation2 + $0x8] sm:$0xff] (!%p1439_p11)  ;;  %v1705_v19 = vld [vmem:[%s2109_s5 + $0xf4] ss:$8 sps:$4 sm:$0xff] (!%p1439_p11)  }
 0x130   : > { %779 = vst [vmem:[#allocation2 + $0x18] sm:$0xff] %v775_v20  ;;  %v796_v46 = vadd.f32 (!%p1439_p11), %v1440_v41, %v785_v40  ;;  %v799_v52 = vmax.f32 (!%p1439_p11), %v795_v45, 0.0  ;;  %1197 = vmatpush1.bf16.msra.mxu1 (!%p1439_p11), %v1683_v4  ;;  %v1707_v20 = vld [vmem:[%s2109_s5 + $0xf0] ss:$8 sps:$4 sm:$0xff] (!%p1439_p11)  }
 0x131   : > { %1198 = vmatprep.subr.bf16.mxu1 %v1684_v5 }
 0x132   : > { %v800_v53 = vmax.f32 %v796_v46, 0.0 }
 0x134   : > { %v803_v58 = vpack.c.bf16 %v800_v53, %v799_v52  ;;  %1199 = vmatpush1.bf16.msra.mxu1 %v1686_v6 }
 0x135   : > { %v786_v54 = vld [vmem:[#allocation2 + $0x10] sm:$0xff]  ;;  %1200 = vmatprep.subr.bf16.mxu1 %v1687_v7 }
 0x136   : > { %v797_v59 = vadd.f32 %v1440_v41, %v786_v54  ;;  %946 = vmatmul.mubr.bf16.vlgmr.msra.gmra.mrb[0].mxu0 %v803_v58 }
 0x137   : > { %v787_v55 = vld [vmem:[#allocation2 + $0x18] sm:$0xff]  ;;  %955 = vmatprep.mubr.bf16.mxu0 %v1773_v23  ;;  %v825_v23 = vsub.s32 0, %v824_v22 }
 0x138   : > { %v798_v60 = vadd.f32 %v1440_v41, %v787_v55  ;;  %v801_v63 = vmax.f32 %v797_v59, 0.0  ;;  %1201 = vmatpush1.bf16.msra.mxu1 %v1689_v8 }
 0x139   : > { %1202 = vmatprep.subr.bf16.mxu1 %v1690_v9  ;;  %v826_v26 = vrot.slane %v821_v24, %v825_v23 }
 0x13a   : > { %v802_v0 = vmax.f32 %v798_v60, 0.0  ;;  %v1015_v60 = vrot.slane %v1010_v56, %v825_v23 }
 0x13c   : > { %v804_v3 = vpack.c.bf16 %v802_v0, %v801_v63  ;;  %1203 = vmatpush1.bf16.msra.mxu1 %v1692_v10 }
 0x13d   : > { %1204 = vmatprep.subr.bf16.mxu1 %v1693_v11 }
 0x13e   : > { %956 = vmatmul.mubr.bf16.gmra.mrb[4].mxu0 %v804_v3 }
 0x140   : > { %1205 = vmatpush1.bf16.msra.mxu1 %v1695_v12 }
 0x141   : > { %1206 = vmatprep.subr.bf16.mxu1 %v1696_v13 }
 0x144   : > { %1207 = vmatpush1.bf16.msra.mxu1 %v1698_v14 }
 0x145   : > { %1208 = vmatprep.subr.bf16.mxu1 %v1699_v15 }
 0x148   : > { %1209 = vmatpush1.bf16.msra.mxu1 %v1701_v16 }
 0x149   : > { %1210 = vmatprep.subr.bf16.mxu1 %v1702_v17 }
 0x14c   : > { %1211 = vmatpush1.bf16.msra.mxu1 %v1704_v18 }
 0x14d   : > { %1212 = vmatprep.subr.bf16.mxu1 %v1705_v19 }
 0x150   : > { %1213 = vmatpush1.bf16.msra.mxu1 %v1707_v20 }
 0x209   : > { %v947_v28 = vpop.f32.mrb[0].mxu0 }
 0x20a   : > { %v948_v29 = vadd.f32 %v947_v28, %v826_v26  ;;  %v949_v30 = vpop.f32.mrb[1].mxu0 }
 0x20b   : > { %v950_v31 = vadd.f32 %v949_v30, %v830_v27  ;;  %v951_v32 = vpop.f32.mrb[2].mxu0 }
 0x20c   : > { %v952_v33 = vadd.f32 %v951_v32, %v826_v26  ;;  %v953_v34 = vpop.f32.mrb[3].mxu0  ;;  %v966_v36 = vmax.f32 %v948_v29, 0.0 }
 0x20d   : > { %v954_v35 = vadd.f32 %v953_v34, %v830_v27  ;;  %v967_v38 = vmax.f32 %v950_v31, 0.0 }
 0x20e   : > { %v968_v37 = vmax.f32 %v952_v33, 0.0 }
 0x20f   : > { %v969_v39 = vmax.f32 %v954_v35, 0.0 }
 0x210   : > { %v974_v40 = vpack.c.bf16 %v968_v37, %v966_v36 }
 0x211   : > { %v957_v41 = vpop.f32.mrb[4].mxu0  ;;  %v975_v42 = vpack.c.bf16 %v969_v39, %v967_v38 }
 0x212   : > { %v958_v43 = vadd.f32 %v957_v41, %v826_v26  ;;  %v959_v44 = vpop.f32.mrb[5].mxu0 }
 0x213   : > { %v960_v45 = vadd.f32 %v959_v44, %v830_v27  ;;  %v961_v46 = vpop.f32.mrb[6].mxu0  ;;  %1214 = vmatprep.mubr.bf16.mxu1 %v975_v42 }
 0x214   : > { %v962_v47 = vadd.f32 %v961_v46, %v826_v26  ;;  %v963_v48 = vpop.f32.mrb[7].mxu0  ;;  %1215 = vmatmul.mubr.bf16.vlgmr.msra.gmra.mrb[0].mxu1 %v974_v40  ;;  %v970_v50 = vmax.f32 %v958_v43, 0.0 }
 0x215   : > { %v964_v49 = vadd.f32 %v963_v48, %v830_v27  ;;  %v971_v52 = vmax.f32 %v960_v45, 0.0 }
 0x216   : > { %v972_v51 = vmax.f32 %v962_v47, 0.0 }
 0x217   : > { %v973_v53 = vmax.f32 %v964_v49, 0.0 }
 0x218   : > { %v976_v54 = vpack.c.bf16 %v972_v51, %v970_v50 }
 0x219   : > { %v977_v55 = vpack.c.bf16 %v973_v53, %v971_v52 }
 0x21b   : > { %1224 = vmatprep.mubr.bf16.mxu1 %v977_v55 }
 0x21c   : > { %1225 = vmatmul.mubr.bf16.gmra.mrb[4].mxu1 %v976_v54 }
 0x2e7   : > { %v1216_v58 = vpop.f32.mrb[0].mxu1 }
 0x2e8   : > { %v1218_v59 = vpop.f32.mrb[1].mxu1  ;;  %v1217_v0 = vadd.f32 %v1216_v58, %v1015_v60 }
 0x2e9   : > { %v1219_v61 = vadd.f32 %v1218_v59, %v1019_v57  ;;  %v1220_v62 = vpop.f32.mrb[2].mxu1 }
 0x2ea   : > { %v1222_v63 = vpop.f32.mrb[3].mxu1  ;;  %v1235_v7 = vmul.f32 %v1217_v0, %v1217_v0  ;;  %v1221_v9 = vadd.f32 %v1220_v62, %v1015_v60 }
 0x2eb   : > { %1263 = vmax.xlane.f32.xlu0 %v1219_v61  ;;  %v1223_v1 = vadd.f32 %v1222_v63, %v1019_v57 }
 0x2ec   : > { %v1236_v13 = vmul.f32 %v1221_v9, %v1221_v9 }
 0x2ef   : > { %v1226_v2 = vpop.f32.mrb[4].mxu1  ;;  %1265 = vmax.xlane.f32.xlu0 %v1223_v1 }
 0x2f0   : > { %v1228_v3 = vpop.f32.mrb[5].mxu1  ;;  %v1227_v4 = vadd.f32 %v1226_v2, %v1015_v60 }
 0x2f1   : > { %v1229_v5 = vadd.f32 %v1228_v3, %v1019_v57  ;;  %v1230_v6 = vpop.f32.mrb[6].mxu1 }
 0x2f2   : > { %v1232_v8 = vpop.f32.mrb[7].mxu1  ;;  %v1237_v11 = vmul.f32 %v1227_v4, %v1227_v4  ;;  %v1231_v12 = vadd.f32 %v1230_v6, %v1015_v60 }
 0x2f3   : > { %1267 = vmax.xlane.f32.xlu1 %v1229_v5  ;;  %1239 = vadd.xlane.f32.xlu0 %v1235_v7  ;;  %v1233_v10 = vadd.f32 %v1232_v8, %v1019_v57 }
 0x2f4   : > { %v1238_v14 = vmul.f32 %v1231_v12, %v1231_v12 }
 0x2f7   : > { %1269 = vmax.xlane.f32.xlu1 %v1233_v10  ;;  %1243 = vadd.xlane.f32.xlu0 %v1237_v11 }
 0x2fb   : > { %1241 = vadd.xlane.f32.xlu1 %v1236_v13 }
 0x2ff   : > { %1245 = vadd.xlane.f32.xlu1 %v1238_v14 }
 0x378   : > { %v1264_v15 = vpop.xlane.xlu0 %1263 }
 0x379   : > { %v1271_v16 = vsub.f32 %v1219_v61, %v1264_v15 }
 0x37b   : > { %v1275_v17 = vmul.f32 1.442695, %v1271_v16 }
 0x37c   : > { %v1266_v18 = vpop.xlane.xlu0 %1265 }
 0x37d   : > { %1708 = vpow2.f32 %v1275_v17  ;;  %v1272_v19 = vsub.f32 %v1223_v1, %v1266_v18 }
 0x37f   : > { %v1277_v20 = vmul.f32 1.442695, %v1272_v19 }
 0x380   : > { %v1268_v21 = vpop.xlane.xlu1 %1267  ;;  %v1240_v22 = vpop.xlane.xlu0 %1239 }
 0x381   : > { %1710 = vpow2.f32 %v1277_v20  ;;  %v1273_v23 = vsub.f32 %v1229_v5, %v1268_v21  ;;  %v1247_v24 = vmax.f32 %v1240_v22, 1e-24 }
 0x383   : > { %v1279_v25 = vmul.f32 1.442695, %v1273_v23  ;;  %1712 = vrsqrt.f32 %v1247_v24 }
 0x384   : > { %v1270_v26 = vpop.xlane.xlu1 %1269  ;;  %v1244_v27 = vpop.xlane.xlu0 %1243 }
 0x385   : > { %1714 = vpow2.f32 %v1279_v25  ;;  %v1274_v28 = vsub.f32 %v1233_v10, %v1270_v26  ;;  %v1249_v29 = vmax.f32 %v1244_v27, 1e-24 }
 0x387   : > { %v1709_v30 = vpop.eup %1708  ;;  %v1281_v31 = vmul.f32 1.442695, %v1274_v28  ;;  %1716 = vrsqrt.f32 %v1249_v29 }
 0x388   : > { %v1242_v32 = vpop.xlane.xlu1 %1241  ;;  %1283 = vadd.xlane.f32.xlu0 %v1709_v30 }
 0x389   : > { %1718 = vpow2.f32 %v1281_v31  ;;  %v1248_v33 = vmax.f32 %v1242_v32, 1e-24 }
 0x38b   : > { %v1711_v34 = vpop.eup %1710  ;;  %1720 = vrsqrt.f32 %v1248_v33 }
 0x38c   : > { %v1246_v35 = vpop.xlane.xlu1 %1245  ;;  %1285 = vadd.xlane.f32.xlu1 %v1711_v34 }
 0x38d   : > { %v1713_v36 = vpop.eup %1712  ;;  %v1250_v37 = vmax.f32 %v1246_v35, 1e-24 }
 0x38e   : > { %v1255_v38 = vmul.f32 %v1713_v36, %v1217_v0 }
 0x38f   : > { %v1715_v39 = vpop.eup %1714  ;;  %1722 = vrsqrt.f32 %v1250_v37 }
 0x390   : > { %1259 = vst [vmem:[%s2111_s7] sm:$0xff] %v1255_v38  ;;  %1287 = vadd.xlane.f32.xlu0 %v1715_v39 }
 0x391   : > { %v1717_v40 = vpop.eup %1716 }
 0x392   : > { %v1257_v41 = vmul.f32 %v1717_v40, %v1227_v4 }
 0x393   : > { %v1719_v42 = vpop.eup %1718 }
 0x394   : > { %1261 = vst [vmem:[%s2111_s7 + $0x20] sm:$0xff] %v1257_v41  ;;  %1289 = vadd.xlane.f32.xlu1 %v1719_v42 }
 0x395   : > { %v1721_v43 = vpop.eup %1720 }
 0x396   : > { %v1256_v44 = vmul.f32 %v1721_v43, %v1221_v9 }
 0x398   : > { %1260 = vst [vmem:[%s2111_s7 + $0x10] sm:$0xff] %v1256_v44 }
 0x399   : > { %v1723_v45 = vpop.eup %1722 }
 0x39a   : > { %v1258_v46 = vmul.f32 %v1723_v45, %v1231_v12 }
 0x39c   : > { %1262 = vst [vmem:[%s2111_s7 + $0x30] sm:$0xff] %v1258_v46 }
 0x415   : > { %v1284_v47 = vpop.xlane.xlu0 %1283 }
 0x416   : > { %1724 = vrcp.f32 %v1284_v47 }
 0x419   : > { %v1286_v48 = vpop.xlane.xlu1 %1285 }
 0x41a   : > { %1726 = vrcp.f32 %v1286_v48 }
 0x41d   : > { %v1288_v49 = vpop.xlane.xlu0 %1287 }
 0x41e   : > { %1728 = vrcp.f32 %v1288_v49 }
 0x420   : > { %v1725_v50 = vpop.eup %1724 }
 0x421   : > { %v1295_v51 = vmul.f32 %v1725_v50, %v1709_v30  ;;  %v1290_v52 = vpop.xlane.xlu1 %1289 }
 0x422   : > { %1730 = vrcp.f32 %v1290_v52 }
 0x423   : > { %1299 = vst [vmem:[%s2111_s7 + $0x8] sm:$0xff] %v1295_v51 }
 0x424   : > { %v1727_v53 = vpop.eup %1726 }
 0x425   : > { %v1296_v54 = vmul.f32 %v1727_v53, %v1711_v34 }
 0x427   : > { %1300 = vst [vmem:[%s2111_s7 + $0x18] sm:$0xff] %v1296_v54 }
 0x428   : > { %v1729_v55 = vpop.eup %1728 }
 0x429   : > { %v1297_v56 = vmul.f32 %v1729_v55, %v1715_v39 }
 0x42b   : > { %1301 = vst [vmem:[%s2111_s7 + $0x28] sm:$0xff] %v1297_v56 }
 0x42c   : > { %v1731_v57 = vpop.eup %1730 }
 0x42d   : > { %v1298_v58 = vmul.f32 %v1731_v57, %v1719_v42 }
 0x42f   : > { %1302 = vst [vmem:[%s2111_s7 + $0x38] sm:$0xff] %v1298_v58 }
 0x430 PF: > { %s17_s28 = sadd.s32 1, %s1770_s28   ;;  %s2112_s24 = smov %s1758_s25 }
 0x431   : > { %p14_p12 = scmp.ge.s32.totalorder %s17_s28, 4   ;;  %s2113_s25 = smov %s1849_s9 }
 0x432   : > { %s2114_s26 = smov %s1766_s27  ;;  %s2115_s27 = smov %s2117_s29 }
 0x433   :  { %16 = sbr.rel (!%p14_p12) target bundleno = 3 (0x3), region = 117 }

</bundles_post_ra>
